<compile_context>
chip_gen: v5e
topology: v5e:2x2
jax: 0.10.0
libtpu: 0.0.40
codegen_flags: <defaults>
</compile_context>

<pallas_src>
import functools

import jax
import jax.numpy as jnp
from jax.experimental import pallas as pl
from jax.experimental.pallas import tpu as pltpu


# Scoped-VMEM limit safe on every generation (v7x: 64 MiB physical per TC;
# v5e/v6e: 128 MiB).  Gives headroom over the 16/32 MiB defaults.
_VMEM_LIMIT_BYTES = 48 * 1024 * 1024


def _round_up(x: int, m: int) -> int:
    return ((x + m - 1) // m) * m


# ---------------------------------------------------------------------------
# Kernel bodies.  Grid = (M_tiles, N_tiles, K_tiles); K is the reduction axis.
# ---------------------------------------------------------------------------

def _mm_kernel_single_k(w_ref, x_ref, o_ref):
    """Single K step: one MXU pass, write the output tile directly."""
    o_ref[...] = jnp.dot(
        w_ref[...], x_ref[...], preferred_element_type=jnp.float32
    ).astype(o_ref.dtype)


def _mm_kernel_acc_in_out(w_ref, x_ref, o_ref):
    """f32 output: accumulate directly into the resident output block."""
    k = pl.program_id(2)

    @pl.when(k == 0)
    def _():
        o_ref[...] = jnp.zeros_like(o_ref)

    o_ref[...] += jnp.dot(
        w_ref[...], x_ref[...], preferred_element_type=jnp.float32
    )


def _mm_kernel_acc_scratch(w_ref, x_ref, o_ref, acc_ref):
    """Narrow output dtype: f32 VMEM accumulator, cast on the last K step."""
    k = pl.program_id(2)

    @pl.when(k == 0)
    def _():
        acc_ref[...] = jnp.zeros_like(acc_ref)

    acc_ref[...] += jnp.dot(
        w_ref[...], x_ref[...], preferred_element_type=jnp.float32
    )

    @pl.when(k == pl.num_programs(2) - 1)
    def _():
        o_ref[...] = acc_ref[...].astype(o_ref.dtype)


# ---------------------------------------------------------------------------
# Wrapper: Pallas equivalent of LinearWrapper.forward
# ---------------------------------------------------------------------------

@functools.partial(jax.jit, static_argnames=("tm", "tn", "tk", "operand_dtype"))
def linear_wrapper_mm(weight, x, *, tm=256, tn=256, tk=512, operand_dtype=None):
    """Returns weight @ x (same semantics as LinearWrapper.forward)."""
    M, K = weight.shape
    K2, N = x.shape
    if K != K2:
        raise ValueError(f"contraction mismatch: {K} vs {K2}")
    out_dtype = weight.dtype

    # Optional operand downcast (accumulation stays f32).  Off by default to
    # preserve exact .mm() semantics.
    if operand_dtype is not None:
        weight = weight.astype(operand_dtype)
        x = x.astype(operand_dtype)

    # Hardware alignment: second-to-last block dims -> multiple of 8,
    # last block dims -> multiple of 128.  Clamp tiles for small problems.
    tm = min(tm, _round_up(M, 8))      # weight rows / output rows
    tk = min(tk, _round_up(K, 128))    # contraction dim
    tn = min(tn, _round_up(N, 128))    # x cols / output cols

    # Zero-pad every dim to a multiple of its tile (exact for a matmul).
    # Replaces the old "tk = K" fallback that could exceed VMEM for large,
    # awkward K.
    M_p, K_p, N_p = _round_up(M, tm), _round_up(K, tk), _round_up(N, tn)
    if (M_p, K_p) != (M, K):
        weight = jnp.pad(weight, ((0, M_p - M), (0, K_p - K)))
    if (K_p, N_p) != (K, N):
        x = jnp.pad(x, ((0, K_p - K), (0, N_p - N)))

    grid = (M_p // tm, N_p // tn, K_p // tk)
    kt = grid[2]

    # Kernel / scratch selection.
    if kt == 1:
        kernel, scratch_shapes = _mm_kernel_single_k, []
    elif jnp.dtype(out_dtype) == jnp.float32:
        kernel, scratch_shapes = _mm_kernel_acc_in_out, []
    else:
        kernel, scratch_shapes = _mm_kernel_acc_scratch, [
            pltpu.VMEM((tm, tn), jnp.float32)
        ]

    # Deeper input pipelining only pays off on long K reduction loops.
    buf_kwargs = {"pipeline_mode": pl.Buffered(3)} if kt >= 8 else {}
    in_specs = [
        pl.BlockSpec((tm, tk), lambda i, j, k: (i, k), **buf_kwargs),  # weight
        pl.BlockSpec((tk, tn), lambda i, j, k: (k, j), **buf_kwargs),  # x
    ]
    out_spec = pl.BlockSpec((tm, tn), lambda i, j, k: (i, j))

    cost = pl.CostEstimate(
        flops=2 * M_p * N_p * K_p,
        transcendentals=0,
        bytes_accessed=(
            M_p * K_p * jnp.dtype(weight.dtype).itemsize
            + K_p * N_p * jnp.dtype(x.dtype).itemsize
            + M_p * N_p * jnp.dtype(out_dtype).itemsize
        ),
    )

    out_p = pl.pallas_call(
        kernel,
        out_shape=jax.ShapeDtypeStruct((M_p, N_p), out_dtype),
        grid_spec=pltpu.PrefetchScalarGridSpec(
            num_scalar_prefetch=0,
            grid=grid,
            in_specs=in_specs,
            out_specs=out_spec,
            scratch_shapes=scratch_shapes,
        ),
        compiler_params=pltpu.CompilerParams(
            # M/N tiles are independent -> megacore-shardable on v7x;
            # K is the trailing reduction axis.
            dimension_semantics=("parallel", "parallel", "arbitrary"),
            vmem_limit_bytes=_VMEM_LIMIT_BYTES,
        ),
        cost_estimate=cost,
    )(weight, x)

    return out_p[:M, :N] if (M_p, N_p) != (M, N) else out_p


if __name__ == "__main__":
    # Deterministic synthetic parameters / inputs (no checkpoint loading).
    key = jax.random.PRNGKey(0)
    k_w, k_x, k_w2, k_x2 = jax.random.split(key, 4)

    # --- Case 1: small module-consistent shapes -> single-MXU-pass fast path.
    M, K, N = 32, 256, 128
    weight = jax.random.normal(k_w, (M, K), dtype=jnp.float32)
    x = jax.random.normal(k_x, (K, N), dtype=jnp.float32)
    out = jax.block_until_ready(linear_wrapper_mm(weight, x))
    ref = weight @ x
    assert out.shape == (M, N)
    assert jnp.allclose(out, ref, atol=1e-4, rtol=1e-4), "case 1 mismatch"

    # --- Case 2: non-divisible dims -> padded, multi-step K reduction with
    #             direct f32 accumulation into the output block.
    M2, K2, N2 = 300, 520, 260
    weight2 = jax.random.normal(k_w2, (M2, K2), dtype=jnp.float32)
    x2 = jax.random.normal(k_x2, (K2, N2), dtype=jnp.float32)
    out2 = jax.block_until_ready(linear_wrapper_mm(weight2, x2))
    ref2 = weight2 @ x2
    assert out2.shape == (M2, N2)
    assert jnp.allclose(out2, ref2, atol=2e-2, rtol=1e-3), "case 2 mismatch"

    # --- Case 3: bf16 weight/activations -> f32 scratch-accumulator path.
    w_bf16 = weight2.astype(jnp.bfloat16)
    x_bf16 = x2.astype(jnp.bfloat16)
    out3 = jax.block_until_ready(linear_wrapper_mm(w_bf16, x_bf16))
    ref3 = w_bf16.astype(jnp.float32) @ x_bf16.astype(jnp.float32)
    assert out3.dtype == jnp.bfloat16 and out3.shape == (M2, N2)
    assert jnp.allclose(out3.astype(jnp.float32), ref3, atol=0.5, rtol=2e-2), (
        "case 3 mismatch"
    )

    print("KERNEL_OK")
</pallas_src>

<mosaic_0001>
module attributes {stable_mosaic.version = 11 : i64} {
  func.func @_mm_kernel_single_k(%arg0: i32, %arg1: i32, %arg2: i32, %arg3: memref<32x256xf32, #tpu.memory_space<vmem>>, %arg4: memref<256x128xf32, #tpu.memory_space<vmem>>, %arg5: memref<32x128xf32, #tpu.memory_space<vmem>>) attributes {dimension_semantics = [#tpu.dimension_semantics<parallel>, #tpu.dimension_semantics<parallel>, #tpu.dimension_semantics<arbitrary>], iteration_bounds = array<i64: 1, 1, 1>, scalar_prefetch = 0 : i64, scratch_operands = 0 : i64, tpu.core_type = #tpu.core_type<tc>, window_params = [{transform_indices = @transform_0, window_bounds = array<i64: 32, 256>}, {transform_indices = @transform_1, window_bounds = array<i64: 256, 128>}, {transform_indices = @transform_2, window_bounds = array<i64: 32, 128>}]} {
    %c0 = arith.constant 0 : index
    %c0_0 = arith.constant 0 : index
    %0 = vector.load %arg3[%c0, %c0_0] : memref<32x256xf32, #tpu.memory_space<vmem>>, vector<32x256xf32>
    %c0_1 = arith.constant 0 : index
    %c0_2 = arith.constant 0 : index
    %1 = vector.load %arg4[%c0_1, %c0_2] : memref<256x128xf32, #tpu.memory_space<vmem>>, vector<256x128xf32>
    %cst = arith.constant dense<0.000000e+00> : vector<32x128xf32>
    %2 = tpu.matmul %0, %1, %cst {dimension_numbers = #tpu.dot_dimension_numbers<[1], [0], [0], [1], [0, 0, 1, 1], [], []>} : vector<32x256xf32>, vector<256x128xf32>, vector<32x128xf32> -> vector<32x128xf32>
    %c0_3 = arith.constant 0 : index
    %c0_4 = arith.constant 0 : index
    %3 = vector.load %arg5[%c0_3, %c0_4] : memref<32x128xf32, #tpu.memory_space<vmem>>, vector<32x128xf32>
    tpu.vector_store %arg5[%c0_3, %c0_4], %2 {strides = array<i32>} : memref<32x128xf32, #tpu.memory_space<vmem>>, vector<32x128xf32>,
    return
  }
  func.func @transform_0(%arg0: i32, %arg1: i32, %arg2: i32) -> (i32, i32) {
    %c0_i32 = arith.constant 0 : i32
    return %arg0, %arg2 : i32, i32
  }
  func.func @transform_1(%arg0: i32, %arg1: i32, %arg2: i32) -> (i32, i32) {
    %c0_i32 = arith.constant 0 : i32
    return %arg2, %arg1 : i32, i32
  }
  func.func @transform_2(%arg0: i32, %arg1: i32, %arg2: i32) -> (i32, i32) {
    %c0_i32 = arith.constant 0 : i32
    return %arg0, %arg1 : i32, i32
  }
}

</mosaic_0001>

<bundles_post_ra>
// kernel: linear_wrapper_mm.1
= control target key start
LH: loop header
LB: loop body
LE: loop exit
PB: predicated region body
PF: predicated region fallthrough
CT: control target
= control target key end

     0   :  { %7 = vsyncpa [#allocation3], 0  ;;  %s320_s0 = inlined_call_operand.hbm [shape: f32[32,256], index: 0, kind: input, shape index: {}]   ;;  %s321_s1 = inlined_call_operand.hbm [shape: f32[256,128], index: 1, kind: input, shape index: {}]   ;;  %s322_s2 = inlined_call_operand.hbm [shape: f32[32,128], index: 2, kind: output, shape index: {}]  }
   0x1   :  { %8 = vsyncpa [#allocation6], 0 }
   0x2   :  { %9 = vsyncpa [#allocation4], 0  ;;  %s14_s11 = sshll.u32 %s320_s0, 4  ;;  %s283_s12 = smov [#allocation2]   ;;  %s15_s11 = int_to_ptr.hbm [resolvable:$true] %s14_s11 }
   0x3   :  { %s16_s13 = sshll.u32 %s283_s12, 4  ;;  %s27_s16 = sshll.u32 %s321_s1, 4  ;;  %s17_s13 = int_to_ptr.vmem [resolvable:$true] %s16_s13  ;;  %s28_s16 = int_to_ptr.hbm [resolvable:$true] %s27_s16 }
   0x4   :  { %s284_s17 = smov 256   ;;  %s285_s18 = smov 16  }
   0x5   :  { %22 = dma.hbm_to_vmem [thread:$0]  %s15_s11, 1024, %s17_s13, [#allocation3], %s284_s17, %s284_s17, %s285_s18  }
   0x6   :  { %s286_s19 = smov [#allocation5]   ;;  %s287_s21 = smov 128  }
   0x7   :  { %s29_s20 = sshll.u32 %s286_s19, 4  ;;  %s288_s22 = smov 8   ;;  %s30_s20 = int_to_ptr.vmem [resolvable:$true] %s29_s20 }
   0x8   :  { %35 = dma.hbm_to_vmem [thread:$0]  %s28_s16, 4096, %s30_s20, [#allocation6], %s287_s21, %s287_s21, %s288_s22  }
   0x9   :  { %277 = dma.done.wait [#allocation3], 1024  }
   0xa   :  { %278 = vsyncadd [#allocation3], 4294966272 }
   0xb   :  { %279 = dma.done.wait [#allocation6], 4096  }
   0xc   :  { %280 = vsyncadd [#allocation6], 4294963200  ;;  %v67_v0 = vld [vmem:[#allocation5 + $0x78] sm:$0xff]  ;;  %v66_v2 = vld [vmem:[#allocation5 + $0x70] sm:$0xff]  ;;  %s289_s0 = smov [#allocation7]   ;;  %s152_s25 = sshll.u32 %s322_s2, 4  ;;  %s153_s25 = int_to_ptr.hbm [resolvable:$true] %s152_s25 }
   0xd   :  { %v83_v1 = vld [vmem:[#allocation5 + $0xf8] sm:$0xff]  ;;  %166 = vmatpush.msra.mxu2 %v67_v0  ;;  %v82_v3 = vld [vmem:[#allocation5 + $0xf0] sm:$0xff]  ;;  %v65_v4 = vld [vmem:[#allocation5 + $0x68] sm:$0xff]  ;;  %84 = vmatpush.msra.mxu0 %v67_v0  ;;  %s150_s1 = sshll.u32 %s289_s0, 4  ;;  %s151_s1 = int_to_ptr.vmem [resolvable:$true] %s150_s1 }
   0xe   :  { %182 = vmatpush.msra.mxu3 %v83_v1  ;;  %v81_v5 = vld [vmem:[#allocation5 + $0xe8] sm:$0xff]  ;;  %113 = vmatpush.msra.mxu1 %v83_v1  ;;  %v64_v6 = vld [vmem:[#allocation5 + $0x60] sm:$0xff]  ;;  %v63_v8 = vld [vmem:[#allocation5 + $0x58] sm:$0xff] }
   0xf   :  { %167 = vmatpush.msra.mxu2 %v66_v2  ;;  %v80_v7 = vld [vmem:[#allocation5 + $0xe0] sm:$0xff]  ;;  %85 = vmatpush.msra.mxu0 %v66_v2  ;;  %v79_v9 = vld [vmem:[#allocation5 + $0xd8] sm:$0xff]  ;;  %v62_v10 = vld [vmem:[#allocation5 + $0x50] sm:$0xff] }
  0x10   :  { %183 = vmatpush.msra.mxu3 %v82_v3  ;;  %114 = vmatpush.msra.mxu1 %v82_v3  ;;  %v78_v11 = vld [vmem:[#allocation5 + $0xd0] sm:$0xff]  ;;  %v61_v12 = vld [vmem:[#allocation5 + $0x48] sm:$0xff]  ;;  %v60_v14 = vld [vmem:[#allocation5 + $0x40] sm:$0xff] }
  0x11   :  { %168 = vmatpush.msra.mxu2 %v65_v4  ;;  %86 = vmatpush.msra.mxu0 %v65_v4  ;;  %v77_v13 = vld [vmem:[#allocation5 + $0xc8] sm:$0xff]  ;;  %v76_v15 = vld [vmem:[#allocation5 + $0xc0] sm:$0xff]  ;;  %v59_v16 = vld [vmem:[#allocation5 + $0x38] sm:$0xff] }
  0x12   :  { %184 = vmatpush.msra.mxu3 %v81_v5  ;;  %115 = vmatpush.msra.mxu1 %v81_v5  ;;  %v75_v17 = vld [vmem:[#allocation5 + $0xb8] sm:$0xff]  ;;  %v58_v18 = vld [vmem:[#allocation5 + $0x30] sm:$0xff]  ;;  %v57_v20 = vld [vmem:[#allocation5 + $0x28] sm:$0xff] }
  0x13   :  { %169 = vmatpush.msra.mxu2 %v64_v6  ;;  %87 = vmatpush.msra.mxu0 %v64_v6  ;;  %v74_v19 = vld [vmem:[#allocation5 + $0xb0] sm:$0xff]  ;;  %v73_v21 = vld [vmem:[#allocation5 + $0xa8] sm:$0xff]  ;;  %v56_v22 = vld [vmem:[#allocation5 + $0x20] sm:$0xff] }
  0x14   :  { %185 = vmatpush.msra.mxu3 %v80_v7  ;;  %116 = vmatpush.msra.mxu1 %v80_v7  ;;  %v72_v23 = vld [vmem:[#allocation5 + $0xa0] sm:$0xff]  ;;  %v55_v24 = vld [vmem:[#allocation5 + $0x18] sm:$0xff]  ;;  %v54_v26 = vld [vmem:[#allocation5 + $0x10] sm:$0xff] }
  0x15   :  { %170 = vmatpush.msra.mxu2 %v63_v8  ;;  %88 = vmatpush.msra.mxu0 %v63_v8  ;;  %v71_v25 = vld [vmem:[#allocation5 + $0x98] sm:$0xff]  ;;  %v70_v27 = vld [vmem:[#allocation5 + $0x90] sm:$0xff]  ;;  %v53_v28 = vld [vmem:[#allocation5 + $0x8] sm:$0xff] }
  0x16   :  { %186 = vmatpush.msra.mxu3 %v79_v9  ;;  %117 = vmatpush.msra.mxu1 %v79_v9  ;;  %v69_v29 = vld [vmem:[#allocation5 + $0x88] sm:$0xff]  ;;  %v52_v30 = vld [vmem:[#allocation5] sm:$0xff]  ;;  %v50_v36 = vld [vmem:[#allocation2 + $0x30] sm:$0xff] }
  0x17   :  { %171 = vmatpush.msra.mxu2 %v62_v10  ;;  %89 = vmatpush.msra.mxu0 %v62_v10  ;;  %v68_v31 = vld [vmem:[#allocation5 + $0x80] sm:$0xff]  ;;  %v49_v33 = vld [vmem:[#allocation2 + $0x28] sm:$0xff]  ;;  %v51_v37 = vld [vmem:[#allocation2 + $0x38] sm:$0xff] }
  0x18   :  { %187 = vmatpush.msra.mxu3 %v78_v11  ;;  %118 = vmatpush.msra.mxu1 %v78_v11  ;;  %v48_v32 = vld [vmem:[#allocation2 + $0x20] sm:$0xff]  ;;  %v45_v35 = vld [vmem:[#allocation2 + $0x8] sm:$0xff]  ;;  %v46_v38 = vld [vmem:[#allocation2 + $0x10] sm:$0xff] }
  0x19   :  { %172 = vmatpush.msra.mxu2 %v61_v12  ;;  %90 = vmatpush.msra.mxu0 %v61_v12  ;;  %v44_v34 = vld [vmem:[#allocation2] sm:$0xff]  ;;  %v47_v39 = vld [vmem:[#allocation2 + $0x18] sm:$0xff] }
  0x1a   :  { %188 = vmatpush.msra.mxu3 %v77_v13  ;;  %119 = vmatpush.msra.mxu1 %v77_v13 }
  0x1b   :  { %173 = vmatpush.msra.mxu2 %v60_v14  ;;  %91 = vmatpush.msra.mxu0 %v60_v14 }
  0x1c   :  { %189 = vmatpush.msra.mxu3 %v76_v15  ;;  %120 = vmatpush.msra.mxu1 %v76_v15 }
  0x1d   :  { %174 = vmatpush.msra.mxu2 %v59_v16  ;;  %92 = vmatpush.msra.mxu0 %v59_v16 }
  0x1e   :  { %190 = vmatpush.msra.mxu3 %v75_v17  ;;  %121 = vmatpush.msra.mxu1 %v75_v17 }
  0x1f   :  { %175 = vmatpush.msra.mxu2 %v58_v18  ;;  %93 = vmatpush.msra.mxu0 %v58_v18 }
  0x20   :  { %191 = vmatpush.msra.mxu3 %v74_v19  ;;  %122 = vmatpush.msra.mxu1 %v74_v19 }
  0x21   :  { %176 = vmatpush.msra.mxu2 %v57_v20  ;;  %94 = vmatpush.msra.mxu0 %v57_v20 }
  0x22   :  { %192 = vmatpush.msra.mxu3 %v73_v21  ;;  %123 = vmatpush.msra.mxu1 %v73_v21 }
  0x23   :  { %177 = vmatpush.msra.mxu2 %v56_v22  ;;  %95 = vmatpush.msra.mxu0 %v56_v22 }
  0x24   :  { %193 = vmatpush.msra.mxu3 %v72_v23  ;;  %124 = vmatpush.msra.mxu1 %v72_v23 }
  0x25   :  { %178 = vmatpush.msra.mxu2 %v55_v24  ;;  %96 = vmatpush.msra.mxu0 %v55_v24 }
  0x26   :  { %194 = vmatpush.msra.mxu3 %v71_v25  ;;  %125 = vmatpush.msra.mxu1 %v71_v25 }
  0x27   :  { %179 = vmatpush.msra.mxu2 %v54_v26  ;;  %97 = vmatpush.msra.mxu0 %v54_v26 }
  0x28   :  { %195 = vmatpush.msra.mxu3 %v70_v27  ;;  %126 = vmatpush.msra.mxu1 %v70_v27 }
  0x29   :  { %180 = vmatpush.msra.mxu2 %v53_v28  ;;  %98 = vmatpush.msra.mxu0 %v53_v28 }
  0x2a   :  { %196 = vmatpush.msra.mxu3 %v69_v29  ;;  %127 = vmatpush.msra.mxu1 %v69_v29 }
  0x2b   :  { %181 = vmatpush.msra.mxu2 %v52_v30  ;;  %99 = vmatpush.msra.mxu0 %v52_v30 }
  0x2c   :  { %197 = vmatpush.msra.mxu3 %v68_v31  ;;  %106 = vmatmul.f32.vlgmr.msra.gmra.mxu2 %v48_v32 }
  0x2d   :  { %135 = vmatmul.f32.vlgmr.msra.gmra.mxu3 %v49_v33  ;;  %128 = vmatpush.msra.mxu1 %v68_v31 }
  0x2e   :  { %100 = vmatmul.f32.vlgmr.msra.gmra.mxu0 %v44_v34  ;;  %129 = vmatmul.f32.vlgmr.msra.gmra.mxu1 %v45_v35 }
  0x34   :  { %109 = vmatmul.f32.gmra.mxu2 %v50_v36 }
  0x35   :  { %138 = vmatmul.f32.gmra.mxu3 %v51_v37 }
  0x36   :  { %103 = vmatmul.f32.gmra.mxu0 %v46_v38  ;;  %132 = vmatmul.f32.gmra.mxu1 %v47_v39 }
  0xab   :  { %v101_v40 = vpop.f32.mrf.mxu0  ;;  %v130_v41 = vpop.f32.mrf.mxu1 }
  0xac   :  { %v131_v42 = vadd.f32 %v130_v41, %v101_v40 }
  0xae   :  { %142 = vst [vmem:[#allocation7] sm:$0xff] %v131_v42 }
  0xaf   :  { %v107_v43 = vpop.f32.mrf.mxu2 }
  0xb0   :  { %v136_v44 = vpop.f32.mrf.mxu3 }
  0xb1   :  { %v137_v45 = vadd.f32 %v136_v44, %v107_v43 }
  0xb3   :  { %144 = vst [vmem:[#allocation7 + $0x10] sm:$0xff] %v137_v45  ;;  %v104_v46 = vpop.f32.mrf.mxu0  ;;  %v133_v47 = vpop.f32.mrf.mxu1 }
  0xb4   :  { %v134_v48 = vadd.f32 %v133_v47, %v104_v46 }
  0xb6   :  { %143 = vst [vmem:[#allocation7 + $0x8] sm:$0xff] %v134_v48 }
  0xb7   :  { %v110_v49 = vpop.f32.mrf.mxu2 }
  0xb8   :  { %v139_v50 = vpop.f32.mrf.mxu3 }
  0xb9   :  { %v140_v51 = vadd.f32 %v139_v50, %v110_v49 }
  0xbb   :  { %145 = vst [vmem:[#allocation7 + $0x18] sm:$0xff] %v140_v51 }
  0xbc   :  { %158 = dma.vmem_to_hbm [thread:$0]  %s151_s1, 512, %s153_s25, [#allocation4], %s287_s21, %s287_s21, %s288_s22  }
  0xbd   :  { %281 = dma.done.wait [#allocation4], 512  }
  0xbe   :  { %282 = vsyncadd [#allocation4], 4294966784 }
  0xbf   :  { %163 = vsyncpa [#allocation3], 1 }
  0xc0   :  { %164 = vsyncpa [#allocation6], 1 }
  0xc1   :  { %165 = vsyncpa [#allocation4], 1 }

</bundles_post_ra>
